<compile_context>
chip_gen: v7x
topology: tpu7x:2x2x1
jax: 0.10.0
libtpu: 0.0.40
codegen_flags: <defaults>
</compile_context>

<pallas_src>
import functools

import jax
import jax.numpy as jnp
from jax.experimental import pallas as pl
from jax.experimental.pallas import tpu as pltpu


def _upsample_rows_kernel(x_ref, o_ref, *, scale: int):
    """x_ref: (TH, W, C) block of input rows (channels-last).
       o_ref: (TH*scale, W*scale, C) block of output rows."""
    th, W, C = x_ref.shape

    def body(h, carry):
        row = x_ref[h]                                            # (W, C)
        # W replication: sublane-axis repeat; lane axis (C) is untouched.
        row_up = jnp.broadcast_to(row[:, None, :], (W, scale, C))
        row_up = row_up.reshape(W * scale, C)                     # (Wo, C)
        # H replication: store the same upsampled row `scale` times.
        for r in range(scale):
            o_ref[h * scale + r] = row_up
        return carry

    jax.lax.fori_loop(0, th, body, 0)


_TARGET_BLOCK_BYTES = 4 << 20   # ~4 MiB of (input + output) traffic per grid step


def _rows_per_block(total_rows: int, W: int, C: int, scale: int, itemsize: int) -> int:
    # in + out bytes generated per input row.
    per_row = W * C * itemsize * (1 + scale * scale)
    th = max(1, _TARGET_BLOCK_BYTES // per_row)
    if total_rows >= 2:
        th = min(th, total_rows // 2)       # keep grid length >= 2 (v7x: 2 TCs)
    th = max(1, min(th, total_rows))
    while total_rows % th:                  # avoid ragged edge blocks
        th -= 1
    return th


def upsample_nearest(x: jax.Array, scale_factor) -> jax.Array:
    """Nearest-neighbor upsample of an NCHW tensor by an integer scale factor."""
    assert x.ndim == 4, "expected NCHW input"
    # TODO(synk): non-integer scale factors and non-'nearest' interpolation modes
    # of F.interpolate are not implemented (YOLOv3 only uses integer 'nearest').
    s_f = float(scale_factor)
    s = int(round(s_f))
    assert s >= 1 and abs(s_f - s) < 1e-9, "only integer scale factors >= 1 supported"

    N, C, H, W = x.shape
    if s == 1:
        return x
    Ho, Wo = H * s, W * s
    itemsize = jnp.dtype(x.dtype).itemsize

    # Channels-last, (N, H) flattened: lane axis = C inside the kernel.
    # Mapping is out_row[o] = in_row[o // s] globally, so identity block index
    # maps work with TH_out = s * TH_in.
    x_rows = jnp.transpose(x, (0, 2, 3, 1)).reshape(N * H, W, C)

    th_in = _rows_per_block(N * H, W, C, s, itemsize)
    th_out = th_in * s
    num_blocks = (N * H) // th_in

    block_bytes = th_in * W * C * itemsize * (1 + s * s)   # in + out per step
    vmem_limit = int(min(max(3 * block_bytes + (2 << 20), 16 << 20), 48 << 20))

    kernel = functools.partial(_upsample_rows_kernel, scale=s)
    out_rows = pl.pallas_call(
        kernel,
        out_shape=jax.ShapeDtypeStruct((N * Ho, Wo, C), x.dtype),
        grid_spec=pltpu.PrefetchScalarGridSpec(
            num_scalar_prefetch=0,
            grid=(num_blocks,),
            in_specs=[pl.BlockSpec((th_in, W, C), lambda i: (i, 0, 0))],
            out_specs=pl.BlockSpec((th_out, Wo, C), lambda i: (i, 0, 0)),
        ),
        compiler_params=pltpu.CompilerParams(
            dimension_semantics=("parallel",),
            vmem_limit_bytes=vmem_limit,
        ),
    )(x_rows)

    # Reshape (free) + transpose back to NCHW: layout plumbing outside the kernel.
    return out_rows.reshape(N, Ho, Wo, C).transpose(0, 3, 1, 2)


class Upsample:
    """Mirror of the PyTorch module (no parameters)."""

    def __init__(self, scale_factor, mode="nearest"):
        assert mode == "nearest", "only nearest mode is implemented"
        self.scale_factor = scale_factor
        self.mode = mode

    def __call__(self, x):
        return upsample_nearest(x, self.scale_factor)


def _reference(x, s):
    return jnp.repeat(jnp.repeat(x, s, axis=2), s, axis=3)


if __name__ == "__main__":
    key = jax.random.PRNGKey(0)

    # Primary case uses a YOLOv3-like channel count (multiple of 128 -> lane-dense
    # stores); the others exercise small-C and odd scale-factor correctness.
    cases = [
        ((2, 128, 16, 16), 2),
        ((2, 4, 16, 16), 2),
        ((1, 4, 8, 8), 3),
    ]

    for shape, s in cases:
        key, sub = jax.random.split(key)
        x = jax.random.normal(sub, shape, dtype=jnp.float32)

        model = Upsample(scale_factor=s, mode="nearest")
        out = jax.block_until_ready(model(x))

        N, C, H, W = shape
        assert out.shape == (N, C, H * s, W * s), out.shape
        assert out.dtype == x.dtype
        assert jnp.array_equal(out, _reference(x, s)), f"mismatch for {shape}, s={s}"

    print("KERNEL_OK")
</pallas_src>

<mosaic_0001>
module attributes {stable_mosaic.version = 11 : i64} {
  func.func @_upsample_rows_kernel(%arg0: i32, %arg1: memref<16x16x128xf32, #tpu.memory_space<vmem>>, %arg2: memref<32x32x128xf32, #tpu.memory_space<vmem>>) attributes {dimension_semantics = [#tpu.dimension_semantics<parallel>], iteration_bounds = array<i64: 2>, scalar_prefetch = 0 : i64, scratch_operands = 0 : i64, tpu.core_type = #tpu.core_type<tc>, window_params = [{transform_indices = @transform_0, window_bounds = array<i64: 16, 16, 128>}, {transform_indices = @transform_1, window_bounds = array<i64: 32, 32, 128>}]} {
    %c0_i32 = arith.constant 0 : i32
    %c16_i32 = arith.constant 16 : i32
    %0 = arith.addi %c0_i32, %c16_i32 : i32
    %c1_i32 = arith.constant 1 : i32
    scf.for %arg3 = %c0_i32 to %0 step %c1_i32  : i32 {
      %1 = arith.index_cast %arg3 : i32 to index
      %c0 = arith.constant 0 : index
      %c0_1 = arith.constant 0 : index
      %2 = vector.load %arg1[%1, %c0, %c0_1] : memref<16x16x128xf32, #tpu.memory_space<vmem>>, vector<1x16x128xf32>
      %3 = vector.shape_cast %2 : vector<1x16x128xf32> to vector<16x128xf32>
      %4 = vector.shape_cast %3 : vector<16x128xf32> to vector<16x1x128xf32>
      %5 = vector.shape_cast %4 : vector<16x1x128xf32> to vector<16x1x128xf32>
      %6 = vector.broadcast %5 : vector<16x1x128xf32> to vector<16x2x128xf32>
      %7 = vector.shape_cast %6 : vector<16x2x128xf32> to vector<32x128xf32>
      %c2_i32 = arith.constant 2 : i32
      %8 = arith.muli %arg3, %c2_i32 : i32
      %c0_i32_2 = arith.constant 0 : i32
      %9 = arith.addi %8, %c0_i32_2 : i32
      %10 = arith.index_cast %9 : i32 to index
      %c0_3 = arith.constant 0 : index
      %c0_4 = arith.constant 0 : index
      %11 = vector.load %arg2[%10, %c0_3, %c0_4] : memref<32x32x128xf32, #tpu.memory_space<vmem>>, vector<1x32x128xf32>
      %12 = vector.shape_cast %11 : vector<1x32x128xf32> to vector<32x128xf32>
      %13 = vector.shape_cast %7 : vector<32x128xf32> to vector<1x32x128xf32>
      tpu.vector_store %arg2[%10, %c0_3, %c0_4], %13 {strides = array<i32>} : memref<32x32x128xf32, #tpu.memory_space<vmem>>, vector<1x32x128xf32>,
      %c2_i32_5 = arith.constant 2 : i32
      %14 = arith.muli %arg3, %c2_i32_5 : i32
      %c1_i32_6 = arith.constant 1 : i32
      %15 = arith.addi %14, %c1_i32_6 : i32
      %16 = arith.index_cast %15 : i32 to index
      %c0_7 = arith.constant 0 : index
      %c0_8 = arith.constant 0 : index
      %17 = vector.load %arg2[%16, %c0_7, %c0_8] : memref<32x32x128xf32, #tpu.memory_space<vmem>>, vector<1x32x128xf32>
      %18 = vector.shape_cast %17 : vector<1x32x128xf32> to vector<32x128xf32>
      %19 = vector.shape_cast %7 : vector<32x128xf32> to vector<1x32x128xf32>
      tpu.vector_store %arg2[%16, %c0_7, %c0_8], %19 {strides = array<i32>} : memref<32x32x128xf32, #tpu.memory_space<vmem>>, vector<1x32x128xf32>,
    }
    %c16_i32_0 = arith.constant 16 : i32
    return
  }
  func.func @transform_0(%arg0: i32) -> (i32, i32, i32) {
    %c0_i32 = arith.constant 0 : i32
    %c0_i32_0 = arith.constant 0 : i32
    %c0_i32_1 = arith.constant 0 : i32
    return %arg0, %c0_i32, %c0_i32_0 : i32, i32, i32
  }
  func.func @transform_1(%arg0: i32) -> (i32, i32, i32) {
    %c0_i32 = arith.constant 0 : i32
    %c0_i32_0 = arith.constant 0 : i32
    %c0_i32_1 = arith.constant 0 : i32
    return %arg0, %c0_i32, %c0_i32_0 : i32, i32, i32
  }
}

</mosaic_0001>

<bundles_post_ra>
// kernel: tpu_custom_call.1
= control target key start
LH: loop header
LB: loop body
LE: loop exit
PB: predicated region body
PF: predicated region fallthrough
CT: control target
= control target key end

     0   :  { %6 = vsyncpa [#allocation3], 0  ;;  %s906_s0 = inlined_call_operand.hbm [shape: f32[32,16,128], index: 0, kind: input, shape index: {}]   ;;  %s907_s1 = inlined_call_operand.hbm [shape: f32[64,32,128], index: 1, kind: output, shape index: {}]  }
   0x1   :  { %8 = vsyncpa [#allocation3 + $0x1], 0 }
   0x2   :  { %9 = vsyncpa [#allocation4], 0 }
   0x3   :  { %11 = vsyncpa [#allocation4 + $0x1], 0  ;;  %s716_s6 = smov 0   ;;  %s718_s7 = smov 0  }
   0x4   :  { %s720_s8 = smov 0   ;;  %s722_s9 = smov 0  }
   0x5 LB: > { %s737_s10 = sadd.s32 4294967295, %s692_s9   ;;  %s499_s11 = sadd.s32 4294967294, %s692_s9   ;;  %s692_s9 = sphi %s722_s9, %s920_s9   ;;  %s688_s8 = sphi %s720_s8, %s919_s8   ;;  %s684_s7 = sphi %s718_s7, %s918_s7   ;;  %s680_s6 = sphi %s716_s6, %s917_s6  }
   0x6   : > { %s741_s12 = sadd.s32 1, %s692_s9   ;;  %s24_s13 = sadd.s32 1, %s688_s8 }
   0x7   : > { %s21_s14 = ssub.s32 %s692_s9, %s741_s12  ;;  %p31_p0 = scmp.ne.s32.totalorder %s688_s8, %s684_s7 }
   0x8   : > { %p22_p1 = scmp.eq.s32.totalorder %s21_s14, 0  ;;  %p32_p2 = scmp.eq.s32.totalorder %s692_s9, 0 }
   0x9   : > { %p37_p3 = scmp.ne.s32.totalorder %s684_s7, %s680_s6  ;;  %p38_p4 = scmp.eq.s32.totalorder %s737_s10, 0 }
   0xa   : > { %s753_s15 = scalar_select %p22_p1, %s688_s8, %s24_s13  }
   0xb   : > { %p755_p5 = por %p32_p2, %p31_p0  ;;  %p759_p6 = por %p38_p4, %p37_p3 }
   0xc   : > { %p61_p7 = scmp.eq.s32.totalorder %s737_s10, 1  ;;  %p67_p8 = scmp.eq.s32.totalorder %s499_s11, 1 }
   0xd   : > { %p542_p10 = scmp.lt.s32.totalorder %s692_s9, 2  ;;  %s87_s20 = sand.u32 1, %s688_s8  }
   0xe   : > { %p766_p11 = por %p61_p7, %p31_p0  ;;  %p770_p12 = por %p67_p8, %p37_p3 }
   0xf   : > { %s525_s21 = sshll.u32 %s692_s9, 12  ;;  %s502_s22 = sshll.u32 %s87_s20, 8 }
  0x10   : > { %s911_s18 = scalar_select %p766_p11, 1, 0 }
  0x11   : > { %s912_s19 = scalar_select %p770_p12, 1, 0 }
  0x12   : > { %s779_s25 = scalar_lea.hbm %s906_s0, %s525_s21  ;;  %s91_s26 = scalar_lea.vmem [#allocation2], %s502_s22 }
  0x13   : > { %s99_s27 = sshll.u32 %s91_s26, 4  ;;  %p783_p13 = pnand %p542_p10, %p755_p5  ;;  %s787_s27 = int_to_ptr.vmem [resolvable:$true] %s99_s27 }
  0x14   : > { %s789_s29 = scalar_lea.sflag [#allocation3], %s87_s20  ;;  %s592_s30 = scalar_lea.hbm %s779_s25, 4096 }
  0x15   : > { %p593_p0 = scmp.ne.s32.totalorder %s779_s25, %s592_s30  ;;  %p594_p1 = pneg %p783_p13 }
  0x16   : > { %s597_s4 = scalar_lea.hbm %s906_s0, 8192  ;;  %p598_p4 = scmp.lt.u32.totalorder %s779_s25, %s906_s0 }
  0x17   : > { %p595_p2 = pnand %p594_p1, %p593_p0  ;;  %p599_p5 = scmp.lt.u32.totalorder %s597_s4, %s592_s30 }
  0x18   : > { %p601_p8 = scmp.lt.u32.totalorder %s592_s30, %s779_s25 }
  0x19   : > { %p596_p3 = pneg %p595_p2  ;;  %p600_p7 = por %p599_p5, %p598_p4 }
  0x1b   : > { %p602_p10 = por %p601_p8, %p600_p7 }
  0x1d   : > { %p603_p9 = pnand %p602_p10, %p596_p3 }
  0x1f   : > { %606 = shalt.err (!%p603_p9)
}
  0x20   : > { %s607_s13 = scalar_lea.vmem %s787_s27, 4096  ;;  %s698_s14 = smov [#allocation2]  }
  0x21   : > { %p608_p0 = scmp.ne.s32.totalorder %s787_s27, %s607_s13  ;;  %s612_s16 = sshll.u32 %s698_s14, 4  ;;  %s613_s16 = int_to_ptr.vmem [resolvable:$false] %s612_s16 }
  0x22   : > { %s614_s20 = scalar_lea.vmem %s613_s16, 8192  ;;  %p615_p11 = scmp.lt.s32.totalorder %s787_s27, %s613_s16 }
  0x23   : > { %p610_p2 = pnand %p608_p0, %p594_p1  ;;  %p616_p4 = scmp.lt.s32.totalorder %s614_s20, %s607_s13 }
  0x25   : > { %p611_p12 = pneg %p610_p2  ;;  %p617_p5 = por %p616_p4, %p615_p11 }
  0x27   : > { %p618_p7 = pnand %p617_p5, %p611_p12 }
  0x29   : > { %621 = shalt.err (!%p618_p7)
}
  0x2a   : > { %s699_s21 = smov 128   ;;  %s700_s22 = smov 8  }
  0x2b   : > { %537 = dma.hbm_to_vmem [thread:$0]  (!%p783_p13), %s779_s25, 4096, %s787_s27, %s789_s29, %s699_s21, %s699_s21, %s700_s22  }
  0x2c   : > { %p506_p9 = scmp.ge.s32.totalorder %s692_s9, 1  ;;  %p107_p1 = scmp.lt.s32.totalorder %s692_s9, 3 }
  0x2e   : > { %p108_p3 = pnand %p506_p9, %p107_p1 }
  0x2f   : > { %s820_s23 = sand.u32 (!%p108_p3), 1, %s684_s7  }
  0x30   : > { %111 = sbr.rel (%p108_p3) target bundleno = 101 (0x65), region = 24  ;;  %s507_s24 = sshll.u32 (!%p108_p3), %s820_s23, 8 }
  0x31   : > { %s114_s26 = scalar_lea.sflag (!%p108_p3), [#allocation3], %s820_s23  ;;  %s824_s30 = scalar_lea.vmem (!%p108_p3), [#allocation2], %s507_s24 }
  0x37   : > { %671 = dma.done.wait (%p759_p6), %s114_s26, 4096  }
  0x38   : > { %673 = vsyncadd (%p759_p6), %s114_s26, 4294963200  ;;  %s508_s25 = sshll.u32 %s820_s23, 10  ;;  %s833_s28 = smov 0  }
  0x39   : > { %s831_s27 = scalar_lea.vmem [#allocation5], %s508_s25 }
  0x3a LB: >> { %v154_v0 = vlaneseq  ;;  %v701_v1 = vmov 1966171168   ;;  %v702_v3 = vmov 1983009808   ;;  %s509_s17 = sshll.u32 %s696_s28, 4  ;;  %s526_s2 = sshll.u32 %s696_s28, 6  ;;  %s696_s28 = sphi %s833_s28, %s143_s28  }
  0x3b   : >> { %v152_v2 = vunpack.c.l.s4 %v701_v1  ;;  %v316_v4 = vunpack.c.l.s4 %v702_v3  ;;  %s145_s29 = scalar_lea.vmem %s824_s30, %s509_s17 [#allocation2]  ;;  %s386_s3 = scalar_lea.vmem %s831_s27, %s526_s2 [#allocation5] }
  0x3c   : >> { %v155_v5 = vshrl.u32 %v154_v0, 7  ;;  %v146_v7 = vld [vmem:[%s145_s29] sm:$0xff]  ;;  %v147_v9 = vld [vmem:[%s145_s29 + $0x8] sm:$0xff]  ;;  %s143_s28 = sadd.s32 1, %s696_s28  }
  0x3d   : >> { %v153_v6 = vunpack.c.0.s8 %v152_v2  ;;  %v317_v8 = vunpack.c.0.s8 %v316_v4  ;;  %v150_v11 = vcombine.high %v146_v7, %v146_v7  ;;  %v199_v12 = vcombine.high %v147_v9, %v147_v9  ;;  %p140_p6 = scmp.ge.s32.totalorder %s143_s28, 16  }
  0x3e   : >> { %v250_v13 = vsub.s32 0, %v155_v5  ;;  %s529_s4 = sshll.u32 (%p140_p6), %s737_s10, 14  ;;  %s413_s14 = sshll.u32 (%p140_p6), %s831_s27, 4  ;;  %s862_s14 = int_to_ptr.vmem [resolvable:$true] %s413_s14 }
  0x3f   : >> { %v156_v10 = vsub.s32 %v153_v6, %v155_v5  ;;  %v840_v18 = vsub.s32 %v317_v8, %v155_v5  ;;  %s859_s13 = scalar_lea.hbm (%p140_p6), %s907_s1, %s529_s4  ;;  %s399_s16 = scalar_lea.sflag (%p140_p6), [#allocation4], %s820_s23 }
  0x40   : > { %s622_s20 = scalar_lea.vmem (%p140_p6), %s862_s14, 16384  ;;  %p914_p12 = scmp.ne.s32.totalorder (%p140_p6), %s911_s18, 0 }
  0x41   : >> { %v157_v14 = vrot.slane %v146_v7, %v156_v10  ;;  %v164_v15 = vrot.slane %v150_v11, %v156_v10  ;;  %v206_v16 = vrot.slane %v147_v9, %v156_v10  ;;  %v213_v17 = vrot.slane %v199_v12, %v156_v10  ;;  %p623_p11 = scmp.ne.s32.totalorder (%p140_p6), %s862_s14, %s622_s20  ;;  %s703_s21 = smov (%p140_p6), [#allocation5]  }
  0x42   : > { %s626_s22 = sshll.u32 (%p140_p6), %s703_s21, 4  ;;  %s627_s22 = int_to_ptr.vmem [resolvable:$false] %s626_s22 }
  0x43   : >> { %v165_v19 = vcombine.high %v157_v14, %v157_v14  ;;  %v173_v20 = vrot.slane %v157_v14, %v156_v10  ;;  %v166_v21 = vcombine.high %v164_v15, %v164_v15  ;;  %v180_v22 = vrot.slane %v164_v15, %v156_v10  ;;  %p624_p13 = pnand (%p140_p6), %p623_p11, %p914_p12  ;;  %s628_s10 = scalar_lea.vmem (%p140_p6), %s627_s22, 32768 }
  0x44   : >> { %v214_v23 = vcombine.high %v206_v16, %v206_v16  ;;  %v222_v24 = vrot.slane %v206_v16, %v156_v10  ;;  %v215_v25 = vcombine.high %v213_v17, %v213_v17  ;;  %v229_v26 = vrot.slane %v213_v17, %v156_v10  ;;  %p629_p10 = scmp.lt.s32.totalorder (%p140_p6), %s862_s14, %s627_s22  ;;  %p630_p0 = scmp.lt.s32.totalorder (%p140_p6), %s628_s10, %s622_s20 }
  0x45   : >> { %v187_v27 = vrot.slane %v165_v19, %v156_v10  ;;  %v195_v28 = vcombine.high %v173_v20, %v173_v20  ;;  %v251_v29 = vrot.slane %v173_v20, %v250_v13  ;;  %v194_v30 = vrot.slane %v166_v21, %v156_v10  ;;  %p625_p8 = pneg (%p140_p6), %p624_p13 }
  0x46   : >> { %v196_v31 = vcombine.high %v180_v22, %v180_v22  ;;  %v267_v32 = vrot.slane %v180_v22, %v250_v13  ;;  %v236_v33 = vrot.slane %v214_v23, %v156_v10  ;;  %v244_v34 = vcombine.high %v222_v24, %v222_v24  ;;  %p631_p2 = por (%p140_p6), %p630_p0, %p629_p10 }
  0x47   : >> { %v197_v35 = vcombine.high %v187_v27, %v187_v27  ;;  %v255_v36 = vrot.slane %v187_v27, %v250_v13  ;;  %v259_v37 = vrot.slane %v195_v28, %v250_v13  ;;  %v198_v38 = vcombine.high %v194_v30, %v194_v30 }
  0x48   : >> { %v271_v39 = vrot.slane %v194_v30, %v250_v13  ;;  %v275_v40 = vrot.slane %v196_v31, %v250_v13  ;;  %v246_v41 = vcombine.high %v236_v33, %v236_v33  ;;  %v283_v42 = vrot.slane %v222_v24, %v250_v13  ;;  %p632_p4 = pnand (%p140_p6), %p631_p2, %p625_p8 }
  0x49   : >> { %v263_v43 = vrot.slane %v197_v35, %v250_v13  ;;  %v313_v44 = vcombine.low %v251_v29, %v255_v36  ;;  %v279_v45 = vrot.slane %v198_v38, %v250_v13  ;;  %v287_v46 = vrot.slane %v236_v33, %v250_v13 }
  0x4a   : >> { %v330_v47 = vcombine.low %v267_v32, %v271_v39  ;;  %v291_v48 = vrot.slane %v244_v34, %v250_v13  ;;  %v295_v49 = vrot.slane %v246_v41, %v250_v13  ;;  %v243_v50 = vrot.slane %v215_v25, %v156_v10 }
  0x4b   : >> { %v314_v51 = vcombine.low %v259_v37, %v263_v43  ;;  %v321_v52 = vrot.slane %v313_v44, %v840_v18  ;;  %v331_v53 = vcombine.low %v275_v40, %v279_v45  ;;  %v347_v54 = vcombine.low %v283_v42, %v287_v46 }
  0x4c   : >> { %v338_v55 = vrot.slane %v330_v47, %v840_v18  ;;  %v348_v56 = vcombine.low %v291_v48, %v295_v49  ;;  %v245_v57 = vcombine.high %v229_v26, %v229_v26  ;;  %v247_v58 = vcombine.high %v243_v50, %v243_v50 }
  0x4d   : >> { %v328_v59 = vrot.slane %v314_v51, %v840_v18  ;;  %v345_v60 = vrot.slane %v331_v53, %v840_v18  ;;  %v355_v61 = vrot.slane %v347_v54, %v840_v18  ;;  %v299_v62 = vrot.slane %v229_v26, %v250_v13 }
  0x4e   : >> { %v362_v63 = vrot.slane %v348_v56, %v840_v18  ;;  %v303_v0 = vrot.slane %v243_v50, %v250_v13  ;;  %v307_v1 = vrot.slane %v245_v57, %v250_v13  ;;  %v311_v2 = vrot.slane %v247_v58, %v250_v13 }
  0x4f   : >> { %v329_v3 = vcombine.low %v321_v52, %v328_v59  ;;  %v346_v4 = vcombine.low %v338_v55, %v345_v60 }
  0x50   : >> { %v363_v5 = vcombine.low %v355_v61, %v362_v63  ;;  %v364_v6 = vcombine.low %v299_v62, %v303_v0  ;;  %v365_v7 = vcombine.low %v307_v1, %v311_v2  ;;  %142 = sbr.rel (!%p140_p6) target bundleno = 58 (0x3a), region = 79 }
  0x51   : >> { %387 = vst [vmem:[%s386_s3] sm:$0xff] %v329_v3  ;;  %514 = vst [vmem:[%s386_s3 + $0x20] sm:$0xff] %v329_v3 }
  0x52   : >> { %388 = vst [vmem:[%s386_s3 + $0x8] sm:$0xff] %v346_v4  ;;  %515 = vst [vmem:[%s386_s3 + $0x28] sm:$0xff] %v346_v4  ;;  %v372_v8 = vrot.slane %v364_v6, %v840_v18  ;;  %v379_v9 = vrot.slane %v365_v7, %v840_v18 }
  0x53   : >> { %389 = vst [vmem:[%s386_s3 + $0x10] sm:$0xff] %v363_v5  ;;  %516 = vst [vmem:[%s386_s3 + $0x30] sm:$0xff] %v363_v5 }
  0x54   : >> { %v380_v10 = vcombine.low %v372_v8, %v379_v9 }
  0x56   : >> { %390 = vst [vmem:[%s386_s3 + $0x18] sm:$0xff] %v380_v10  ;;  %517 = vst [vmem:[%s386_s3 + $0x38] sm:$0xff] %v380_v10 }
  0x57   : > { %635 = shalt.err (!%p632_p4)
}
  0x58   : > { %s636_s24 = scalar_lea.hbm %s859_s13, 16384  ;;  %s640_s25 = scalar_lea.hbm %s907_s1, 32768 }
  0x59   : > { %p637_p5 = scmp.ne.s32.totalorder %s859_s13, %s636_s24  ;;  %p641_p1 = scmp.lt.u32.totalorder %s859_s13, %s907_s1 }
  0x5a   : > { %p642_p3 = scmp.lt.u32.totalorder %s640_s25, %s636_s24  ;;  %p644_p11 = scmp.lt.u32.totalorder %s636_s24, %s859_s13 }
  0x5b   : > { %p638_p7 = pnand %p637_p5, %p914_p12 }
  0x5c   : > { %p643_p6 = por %p642_p3, %p641_p1 }
  0x5d   : > { %p639_p9 = pneg %p638_p7 }
  0x5e   : > { %p645_p13 = por %p644_p11, %p643_p6 }
  0x60   : > { %p646_p8 = pnand %p645_p13, %p639_p9 }
  0x62   : > { %649 = shalt.err (!%p646_p8)
}
  0x63   : > { %s704_s17 = smov 128   ;;  %s705_s29 = smov 8  }
  0x64   : > { %532 = dma.vmem_to_hbm [thread:$0]  (%p914_p12), %s862_s14, 16384, %s859_s13, %s399_s16, %s704_s17, %s704_s17, %s705_s29  }
  0x65 PF: > { %s428_s2 = sand.u32 1, %s680_s6   ;;  %p915_p10 = scmp.ne.s32.totalorder %s912_s19, 0 }
  0x66   : > { %p916_p0 = scmp.ge.s32.totalorder %s692_s9, 2  ;;  %s429_s3 = scalar_lea.sflag [#allocation4], %s428_s2 }
  0x68   : > { %p539_p2 = pnand %p916_p0, %p915_p10 }
  0x6a   : > { %675 = dma.done.wait (!%p539_p2), %s429_s3, 16384  }
  0x6b   : > { %677 = vsyncadd (!%p539_p2), %s429_s3, 4294950912  ;;  %p14_p4 = scmp.ge.s32.totalorder %s741_s12, 4   ;;  %s917_s6 = smov %s684_s7 }
  0x6c   : > { %s918_s7 = smov %s688_s8  ;;  %s919_s8 = smov %s753_s15 }
  0x6d   : > { %s920_s9 = smov %s741_s12  ;;  %16 = sbr.rel (!%p14_p4) target bundleno = 5 (0x5), region = 90 }
  0x74   :  { %434 = vsyncpa [#allocation3], 1 }
  0x75   :  { %436 = vsyncpa [#allocation3 + $0x1], 1 }
  0x76   :  { %437 = vsyncpa [#allocation4], 1 }
  0x77   :  { %439 = vsyncpa [#allocation4 + $0x1], 1 }

</bundles_post_ra>
